<compile_context>
chip_gen: v5e
topology: v5e:2x2
jax: 0.10.0
libtpu: 0.0.40
codegen_flags: <defaults>
</compile_context>

<pallas_src>
import functools
import math

import jax
import jax.numpy as jnp
from jax.experimental import pallas as pl
from jax.experimental.pallas import tpu as pltpu


def _round_up(x, m):
    return (x + m - 1) // m * m


def _gelu_tanh(x):
    # GELU(approximate='tanh'):
    # 0.5 * x * (1 + tanh(sqrt(2/pi) * (x + 0.044715 * x^3)))
    c = math.sqrt(2.0 / math.pi)
    return 0.5 * x * (1.0 + jnp.tanh(c * (x + 0.044715 * x * x * x)))


def _vmem_budget_bytes():
    """Per-core VMEM budget: physical capacity with ~15% headroom."""
    try:
        cap = int(pltpu.get_tpu_info().vmem_capacity_bytes)
    except Exception:
        cap = None
    if not cap or cap <= 0:
        cap = 64 << 20  # conservative fallback: v7x per-TensorCore VMEM
    return int(cap * 0.85)


def _has_bf16_vpu():
    """v5e has no bf16 VPU/EUP -> keep the GELU epilogue in f32 there."""
    try:
        kind = jax.devices()[0].device_kind.lower()
    except Exception:
        return True
    return not ("v5 lite" in kind or "v5e" in kind or "v5litepod" in kind)


def _mlp_resident_kernel(x_ref, wfc_ref, bfc_ref, wpr_ref, bpr_ref, o_ref, *,
                         act_dtype):
    # x_ref:  (tm, C) token row tile (pipelined / double-buffered)
    # wfc_ref:(C, H)  fc weight, whole matrix resident in VMEM
    # bfc_ref:(1, H)  f32
    # wpr_ref:(H, C)  proj weight, resident in VMEM
    # bpr_ref:(1, C)  f32
    # o_ref:  (tm, C)
    h = jnp.dot(x_ref[...], wfc_ref[...], preferred_element_type=jnp.float32)
    h = h + bfc_ref[...]
    g = _gelu_tanh(h.astype(act_dtype))
    y = jnp.dot(g.astype(wpr_ref.dtype), wpr_ref[...],
                preferred_element_type=jnp.float32)
    y = y + bpr_ref[...]
    o_ref[...] = y.astype(o_ref.dtype)


def _mlp_stream_kernel(x_ref, wfc_ref, bfc_ref, wpr_ref, bpr_ref, o_ref,
                       acc_ref, *, act_dtype):
    # Hidden-dim streaming: grid = (row_tiles, H // th), hidden axis arbitrary.
    # x_ref:  (tm, C)  (same block across the h axis -> no re-DMA)
    # wfc_ref:(C, th)  column block      bfc_ref:(1, th) f32
    # wpr_ref:(th, C)  row block         bpr_ref:(1, C)  f32
    # acc_ref:(tm, C)  f32 VMEM scratch accumulator
    k = pl.program_id(1)

    @pl.when(k == 0)
    def _():
        acc_ref[...] = jnp.zeros_like(acc_ref)

    h = jnp.dot(x_ref[...], wfc_ref[...], preferred_element_type=jnp.float32)
    h = h + bfc_ref[...]
    g = _gelu_tanh(h.astype(act_dtype))
    acc_ref[...] += jnp.dot(g.astype(wpr_ref.dtype), wpr_ref[...],
                            preferred_element_type=jnp.float32)

    @pl.when(k == pl.num_programs(1) - 1)
    def _():
        o_ref[...] = (acc_ref[...] + bpr_ref[...]).astype(o_ref.dtype)


def mlp_pallas(x, w_fc, b_fc, w_proj, b_proj, *,
               compute_dtype=jnp.bfloat16, tm=None, th=None, mode="auto"):
    """gelu_tanh(x @ W_fc + b_fc) @ W_proj + b_proj.   x: (B, T, C)."""
    assert mode in ("auto", "resident", "stream")
    B, T, C = x.shape
    H = w_fc.shape[1]
    M = B * T
    out_dtype = x.dtype

    # Cast to the MXU compute dtype (bf16 by default: single biggest
    # throughput lever on every TPU generation).  Biases stay f32.
    x2d = x.reshape(M, C).astype(compute_dtype)
    w_fc = w_fc.astype(compute_dtype)
    w_proj = w_proj.astype(compute_dtype)
    b_fc2 = b_fc.reshape(1, H).astype(jnp.float32)
    b_pr2 = b_proj.reshape(1, C).astype(jnp.float32)

    c_bytes = jnp.dtype(compute_dtype).itemsize
    o_bytes = jnp.dtype(out_dtype).itemsize

    # Sublane-packing minimum for the row tile (8 f32 rows, 16 bf16 rows).
    packing = max(1, 4 // c_bytes)
    row_align = 8 * packing

    # MXU-shaped row tile; 512 at large B*T to amortize ~0.35us/step overhead.
    if tm is None:
        tm = 512 if M >= 4096 else 256
    tm = max(row_align, min(_round_up(tm, row_align), _round_up(M, row_align)))
    M_pad = _round_up(M, tm)
    # Give both v7x TensorCores work when possible (>= 2 row tiles).
    if M_pad // tm < 2 and M > row_align:
        tm = max(row_align, _round_up((M + 1) // 2, row_align))
        M_pad = _round_up(M, tm)

    if M_pad != M:
        x2d = jnp.pad(x2d, ((0, M_pad - M), (0, 0)))

    # v5e's VPU/EUP have no bf16: keep the GELU epilogue in f32 there.
    act_dtype = compute_dtype if (c_bytes == 2 and _has_bf16_vpu()) else jnp.float32

    budget = _vmem_budget_bytes()

    flops = 2 * 2 * M_pad * C * H          # two matmuls
    transcendentals = M_pad * H            # tanh in the GELU
    weight_bytes = 2 * C * H * c_bytes + (H + C) * 4

    # ---------------- resident-weights path ----------------
    resident_bytes = (weight_bytes
                      + 2 * 2 * tm * C * c_bytes     # x tile, double-buffered
                      + 2 * tm * C * o_bytes         # out tile, double-buffered
                      + 2 * tm * H * 4               # (tm, H) f32 intermediate
                      + (4 << 20))                   # headroom
    use_resident = (mode == "resident") or (mode == "auto" and resident_bytes <= budget)

    if use_resident:
        # TODO(synk): for decode-style per-layer calls, prefetch W_fc/W_proj
        # across pallas_call boundaries (cross-call VMEM future) to hide the
        # upfront resident-weight HBM->VMEM copy.
        vmem_limit = int(min(max(resident_bytes, 32 << 20), budget))
        kernel = functools.partial(_mlp_resident_kernel, act_dtype=act_dtype)
        resident = pltpu.MemorySpace.VMEM
        out2d = pl.pallas_call(
            kernel,
            out_shape=jax.ShapeDtypeStruct((M_pad, C), out_dtype),
            grid_spec=pltpu.PrefetchScalarGridSpec(
                num_scalar_prefetch=0,
                grid=(M_pad // tm,),
                in_specs=[
                    pl.BlockSpec((tm, C), lambda i: (i, 0)),   # x row tile
                    pl.BlockSpec(memory_space=resident),       # W_fc (resident)
                    pl.BlockSpec(memory_space=resident),       # b_fc
                    pl.BlockSpec(memory_space=resident),       # W_proj (resident)
                    pl.BlockSpec(memory_space=resident),       # b_proj
                ],
                out_specs=pl.BlockSpec((tm, C), lambda i: (i, 0)),
            ),
            compiler_params=pltpu.CompilerParams(
                dimension_semantics=("parallel",),
                vmem_limit_bytes=vmem_limit,
            ),
            cost_estimate=pl.CostEstimate(
                flops=flops, transcendentals=transcendentals,
                bytes_accessed=M_pad * C * (c_bytes + o_bytes) + weight_bytes),
        )(x2d, w_fc, b_fc2, w_proj, b_pr2)
        return out2d[:M].reshape(B, T, C)

    # ---------------- hidden-dim streaming path ----------------
    # Weights (or the (tm, H) intermediate) don't fit the VMEM budget
    # (e.g. GPT-2 medium/XL on v7x): stream W_fc column / W_proj row blocks
    # along an "arbitrary" hidden axis and accumulate into f32 VMEM scratch.
    if th is None:
        for cand in (512, 384, 256, 128):
            if H % cand == 0:
                th = cand
                break
        else:
            th = H
    assert H % th == 0, "hidden tile th must divide 4*n_embd"

    stream_bytes = (2 * 2 * C * th * c_bytes        # W_fc/W_proj tiles, dbl-buffered
                    + 2 * (th + C) * 4              # bias tiles
                    + 2 * tm * C * c_bytes          # x tile
                    + 2 * tm * C * o_bytes          # out tile
                    + tm * C * 4                    # f32 accumulator scratch
                    + 2 * tm * th * 4               # (tm, th) f32 intermediate
                    + (4 << 20))
    vmem_limit = int(min(max(stream_bytes, 32 << 20), budget))
    kernel = functools.partial(_mlp_stream_kernel, act_dtype=act_dtype)

    out2d = pl.pallas_call(
        kernel,
        out_shape=jax.ShapeDtypeStruct((M_pad, C), out_dtype),
        grid_spec=pltpu.PrefetchScalarGridSpec(
            num_scalar_prefetch=0,
            grid=(M_pad // tm, H // th),
            in_specs=[
                pl.BlockSpec((tm, C), lambda i, k: (i, 0)),   # x tile (kept per i)
                pl.BlockSpec((C, th), lambda i, k: (0, k)),   # W_fc column block
                pl.BlockSpec((1, th), lambda i, k: (0, k)),   # b_fc block
                pl.BlockSpec((th, C), lambda i, k: (k, 0)),   # W_proj row block
                pl.BlockSpec((1, C), lambda i, k: (0, 0)),    # b_proj
            ],
            out_specs=pl.BlockSpec((tm, C), lambda i, k: (i, 0)),
            scratch_shapes=[pltpu.VMEM((tm, C), jnp.float32)],
        ),
        compiler_params=pltpu.CompilerParams(
            dimension_semantics=("parallel", "arbitrary"),
            vmem_limit_bytes=vmem_limit,
        ),
        cost_estimate=pl.CostEstimate(
            flops=flops, transcendentals=transcendentals,
            bytes_accessed=(M_pad * C * (c_bytes + o_bytes)
                            + (M_pad // tm) * weight_bytes)),
    )(x2d, w_fc, b_fc2, w_proj, b_pr2)
    return out2d[:M].reshape(B, T, C)


def mlp_reference(x, w_fc, b_fc, w_proj, b_proj):
    h = jnp.einsum("btc,ch->bth", x, w_fc) + b_fc
    h = _gelu_tanh(h)
    return jnp.einsum("bth,hc->btc", h, w_proj) + b_proj


if __name__ == "__main__":
    # Small GPT-like config: n_embd=128, hidden=4*128=512, batch=2, seq=8.
    B, T, C = 2, 8, 128
    H = 4 * C

    key = jax.random.PRNGKey(0)
    kx, k1, k2, k3, k4 = jax.random.split(key, 5)

    x = jax.random.normal(kx, (B, T, C), dtype=jnp.float32)

    bound_fc = 1.0 / math.sqrt(C)
    w_fc = jax.random.uniform(k1, (C, H), jnp.float32, -bound_fc, bound_fc)
    b_fc = jax.random.uniform(k2, (H,), jnp.float32, -bound_fc, bound_fc)

    bound_pr = 1.0 / math.sqrt(H)
    w_proj = jax.random.uniform(k3, (H, C), jnp.float32, -bound_pr, bound_pr)
    b_proj = jax.random.uniform(k4, (C,), jnp.float32, -bound_pr, bound_pr)

    ref = mlp_reference(x, w_fc, b_fc, w_proj, b_proj)

    # 1) f32 compute, resident-weight path: tight correctness check.
    out_f32 = mlp_pallas(x, w_fc, b_fc, w_proj, b_proj,
                         compute_dtype=jnp.float32, mode="resident")
    jax.block_until_ready(out_f32)
    assert out_f32.shape == (B, T, C)
    assert jnp.allclose(out_f32, ref, atol=1e-3, rtol=1e-3), (
        float(jnp.max(jnp.abs(out_f32 - ref))))

    # 2) bf16 compute (default fast path), resident weights.
    out_bf16 = mlp_pallas(x, w_fc, b_fc, w_proj, b_proj, mode="resident")
    jax.block_until_ready(out_bf16)
    err = jnp.abs(out_bf16.astype(jnp.float32) - ref)
    assert jnp.allclose(out_bf16.astype(jnp.float32), ref, atol=3e-2, rtol=3e-2), (
        float(jnp.max(err)))

    # 3) bf16 compute, hidden-dim streaming path (th=256 -> 2 h-steps).
    out_stream = mlp_pallas(x, w_fc, b_fc, w_proj, b_proj, mode="stream", th=256)
    jax.block_until_ready(out_stream)
    err = jnp.abs(out_stream.astype(jnp.float32) - ref)
    assert jnp.allclose(out_stream.astype(jnp.float32), ref, atol=3e-2, rtol=3e-2), (
        float(jnp.max(err)))

    print("KERNEL_OK")
</pallas_src>

<mosaic_0001>
module attributes {stable_mosaic.version = 11 : i64} {
  func.func @_mlp_resident_kernel(%arg0: i32, %arg1: memref<8x128xf32, #tpu.memory_space<vmem>>, %arg2: memref<128x512xf32, #tpu.memory_space<vmem>>, %arg3: memref<1x512xf32, #tpu.memory_space<vmem>>, %arg4: memref<512x128xf32, #tpu.memory_space<vmem>>, %arg5: memref<1x128xf32, #tpu.memory_space<vmem>>, %arg6: memref<8x128xf32, #tpu.memory_space<vmem>>) attributes {dimension_semantics = [#tpu.dimension_semantics<parallel>], iteration_bounds = array<i64: 2>, scalar_prefetch = 0 : i64, scratch_operands = 0 : i64, tpu.core_type = #tpu.core_type<tc>, window_params = [{transform_indices = @transform_0, window_bounds = array<i64: 8, 128>}, {pipeline_mode = #tpu.pipeline_mode<synchronous>, transform_indices = @transform_1, window_bounds = array<i64: 128, 512>}, {pipeline_mode = #tpu.pipeline_mode<synchronous>, transform_indices = @transform_2, window_bounds = array<i64: 1, 512>}, {pipeline_mode = #tpu.pipeline_mode<synchronous>, transform_indices = @transform_3, window_bounds = array<i64: 512, 128>}, {pipeline_mode = #tpu.pipeline_mode<synchronous>, transform_indices = @transform_4, window_bounds = array<i64: 1, 128>}, {transform_indices = @transform_5, window_bounds = array<i64: 8, 128>}]} {
    %c0 = arith.constant 0 : index
    %c0_0 = arith.constant 0 : index
    %0 = vector.load %arg1[%c0, %c0_0] : memref<8x128xf32, #tpu.memory_space<vmem>>, vector<8x128xf32>
    %c0_1 = arith.constant 0 : index
    %c0_2 = arith.constant 0 : index
    %1 = vector.load %arg2[%c0_1, %c0_2] : memref<128x512xf32, #tpu.memory_space<vmem>>, vector<128x512xf32>
    %cst = arith.constant dense<0.000000e+00> : vector<8x512xf32>
    %2 = tpu.matmul %0, %1, %cst {dimension_numbers = #tpu.dot_dimension_numbers<[1], [0], [0], [1], [0, 0, 1, 1], [], []>} : vector<8x128xf32>, vector<128x512xf32>, vector<8x512xf32> -> vector<8x512xf32>
    %c0_3 = arith.constant 0 : index
    %c0_4 = arith.constant 0 : index
    %3 = vector.load %arg3[%c0_3, %c0_4] : memref<1x512xf32, #tpu.memory_space<vmem>>, vector<1x512xf32>
    %4 = vector.broadcast %3 : vector<1x512xf32> to vector<8x512xf32>
    %5 = arith.addf %2, %4 : vector<8x512xf32>
    %cst_5 = arith.constant 5.000000e-01 : f32
    %6 = vector.broadcast %cst_5 : f32 to vector<8x512xf32>
    %7 = arith.mulf %6, %5 : vector<8x512xf32>
    %cst_6 = arith.constant 4.471500e-02 : f32
    %8 = vector.broadcast %cst_6 : f32 to vector<8x512xf32>
    %9 = arith.mulf %8, %5 : vector<8x512xf32>
    %10 = arith.mulf %9, %5 : vector<8x512xf32>
    %11 = arith.mulf %10, %5 : vector<8x512xf32>
    %12 = arith.addf %5, %11 : vector<8x512xf32>
    %cst_7 = arith.constant 0.797884583 : f32
    %13 = vector.broadcast %cst_7 : f32 to vector<8x512xf32>
    %14 = arith.mulf %13, %12 : vector<8x512xf32>
    %15 = math.tanh %14 : vector<8x512xf32>
    %cst_8 = arith.constant 1.000000e+00 : f32
    %16 = vector.broadcast %cst_8 : f32 to vector<8x512xf32>
    %17 = arith.addf %16, %15 : vector<8x512xf32>
    %18 = arith.mulf %7, %17 : vector<8x512xf32>
    %c0_9 = arith.constant 0 : index
    %c0_10 = arith.constant 0 : index
    %19 = vector.load %arg4[%c0_9, %c0_10] : memref<512x128xf32, #tpu.memory_space<vmem>>, vector<512x128xf32>
    %cst_11 = arith.constant dense<0.000000e+00> : vector<8x128xf32>
    %20 = tpu.matmul %18, %19, %cst_11 {dimension_numbers = #tpu.dot_dimension_numbers<[1], [0], [0], [1], [0, 0, 1, 1], [], []>} : vector<8x512xf32>, vector<512x128xf32>, vector<8x128xf32> -> vector<8x128xf32>
    %c0_12 = arith.constant 0 : index
    %c0_13 = arith.constant 0 : index
    %21 = vector.load %arg5[%c0_12, %c0_13] : memref<1x128xf32, #tpu.memory_space<vmem>>, vector<1x128xf32>
    %22 = vector.broadcast %21 : vector<1x128xf32> to vector<8x128xf32>
    %23 = arith.addf %20, %22 : vector<8x128xf32>
    %c0_14 = arith.constant 0 : index
    %c0_15 = arith.constant 0 : index
    %24 = vector.load %arg6[%c0_14, %c0_15] : memref<8x128xf32, #tpu.memory_space<vmem>>, vector<8x128xf32>
    tpu.vector_store %arg6[%c0_14, %c0_15], %23 {strides = array<i32>} : memref<8x128xf32, #tpu.memory_space<vmem>>, vector<8x128xf32>,
    return
  }
  func.func @transform_0(%arg0: i32) -> (i32, i32) {
    %c0_i32 = arith.constant 0 : i32
    %c0_i32_0 = arith.constant 0 : i32
    return %arg0, %c0_i32 : i32, i32
  }
  func.func @transform_1(%arg0: i32) -> (i32, i32) {
    %c0_i32 = arith.constant 0 : i32
    %c0_i32_0 = arith.constant 0 : i32
    %c0_i32_1 = arith.constant 0 : i32
    return %c0_i32, %c0_i32_0 : i32, i32
  }
  func.func @transform_2(%arg0: i32) -> (i32, i32) {
    %c0_i32 = arith.constant 0 : i32
    %c0_i32_0 = arith.constant 0 : i32
    %c0_i32_1 = arith.constant 0 : i32
    return %c0_i32, %c0_i32_0 : i32, i32
  }
  func.func @transform_3(%arg0: i32) -> (i32, i32) {
    %c0_i32 = arith.constant 0 : i32
    %c0_i32_0 = arith.constant 0 : i32
    %c0_i32_1 = arith.constant 0 : i32
    return %c0_i32, %c0_i32_0 : i32, i32
  }
  func.func @transform_4(%arg0: i32) -> (i32, i32) {
    %c0_i32 = arith.constant 0 : i32
    %c0_i32_0 = arith.constant 0 : i32
    %c0_i32_1 = arith.constant 0 : i32
    return %c0_i32, %c0_i32_0 : i32, i32
  }
  func.func @transform_5(%arg0: i32) -> (i32, i32) {
    %c0_i32 = arith.constant 0 : i32
    %c0_i32_0 = arith.constant 0 : i32
    return %arg0, %c0_i32 : i32, i32
  }
}

</mosaic_0001>

<bundles_post_ra>
// kernel: tpu_custom_call.1
= control target key start
LH: loop header
LB: loop body
LE: loop exit
PB: predicated region body
PF: predicated region fallthrough
CT: control target
= control target key end

     0   :  { %10 = vsyncpa [#allocation3], 0  ;;  %s1252_s0 = inlined_call_operand.hbm [shape: f32[16,128], index: 0, kind: input, shape index: {}]   ;;  %s1253_s1 = inlined_call_operand.hbm [shape: f32[128,512], index: 1, kind: input, shape index: {}]   ;;  %s1254_s2 = inlined_call_operand.hbm [shape: f32[1,512], index: 2, kind: input, shape index: {}]   ;;  %s1255_s3 = inlined_call_operand.hbm [shape: f32[512,128], index: 3, kind: input, shape index: {}]   ;;  %s1256_s4 = inlined_call_operand.vmem [shape: f32[1,128], index: 4, kind: input, shape index: {}]   ;;  %s1257_s5 = inlined_call_operand.hbm [shape: f32[16,128], index: 5, kind: output, shape index: {}]  }
   0x1   :  { %12 = vsyncpa [#allocation3 + $0x1], 0 }
   0x2   :  { %13 = vsyncpa [#allocation6], 0 }
   0x3   :  { %14 = vsyncpa [#allocation9], 0 }
   0x4   :  { %15 = vsyncpa [#allocation4], 0 }
   0x5   :  { %17 = vsyncpa [#allocation4 + $0x1], 0  ;;  %s1086_s18 = smov 0   ;;  %s1088_s19 = smov 0  }
   0x6   :  { %s1090_s20 = smov 0   ;;  %s1092_s21 = smov 0  }
   0x7 LB: > { %s175_s24 = sshll.u32 %s1253_s1, 4  ;;  %s1110_s25 = sadd.s32 4294967295, %s1047_s21   ;;  %s1047_s21 = sphi %s1092_s21, %s1268_s21   ;;  %s1043_s20 = sphi %s1090_s20, %s1267_s20   ;;  %s1039_s19 = sphi %s1088_s19, %s1266_s19   ;;  %s1035_s18 = sphi %s1086_s18, %s1265_s18   ;;  %s176_s24 = int_to_ptr.hbm [resolvable:$true] %s175_s24 }
   0x8   : > { %p746_p0 = scmp.ge.s32.totalorder %s1047_s21, 1  ;;  %p44_p1 = scmp.eq.s32.totalorder %s1110_s25, 0 }
   0x9   : > { %p164_p2 = scmp.lt.s32.totalorder %s1047_s21, 3  ;;  %s1049_s27 = smov [#allocation5]  }
   0xa   : > { %s177_s28 = sshll.u32 %s1049_s27, 4  ;;  %s190_s6 = sshll.u32 %s1254_s2, 4  ;;  %s178_s28 = int_to_ptr.vmem [resolvable:$true] %s177_s28  ;;  %s191_s6 = int_to_ptr.hbm [resolvable:$true] %s190_s6 }
   0xb   : > { %p1115_p3 = pnand %p746_p0, %p164_p2  ;;  %s201_s10 = sshll.u32 %s1255_s3, 4  ;;  %s202_s10 = int_to_ptr.hbm [resolvable:$true] %s201_s10 }
   0xc   : > { %s1050_s11 = smov [#allocation7]   ;;  %s1051_s13 = smov 512  }
   0xd   : > { %p779_p4 = pneg %p1115_p3  ;;  %s192_s12 = sshll.u32 %s1050_s11, 4  ;;  %s193_s12 = int_to_ptr.vmem [resolvable:$true] %s192_s12 }
   0xe   : > { %s1052_s14 = smov 32   ;;  %s1053_s15 = smov [#allocation8]  }
   0xf   : > { %p1127_p6 = pnand %p779_p4, %p44_p1  ;;  %s203_s16 = sshll.u32 %s1053_s15, 4  ;;  %s204_s16 = int_to_ptr.vmem [resolvable:$true] %s203_s16 }
  0x10   : > { %s1054_s17 = smov 128   ;;  %s1055_s22 = smov 8  }
  0x11   : > { %782 = dma.hbm_to_vmem [thread:$0]  (!%p1127_p6), %s176_s24, 8192, %s178_s28, [#allocation6], %s1051_s13, %s1051_s13, %s1052_s14  }
  0x12   : > { %785 = dma.hbm_to_vmem [thread:$0]  (!%p1127_p6), %s191_s6, 64, %s193_s12, [#allocation6]  }
  0x13   : > { %788 = dma.hbm_to_vmem [thread:$0]  (!%p1127_p6), %s202_s10, 8192, %s204_s16, [#allocation9], %s1054_s17, %s1054_s17, %s1055_s22  }
  0x14   : > { %s745_s23 = sadd.s32 4294967294, %s1047_s21   ;;  %s1142_s24 = sadd.s32 1, %s1047_s21  }
  0x15   : > { %s30_s27 = sadd.s32 1, %s1043_s20  ;;  %s27_s28 = ssub.s32 %s1047_s21, %s1142_s24 }
  0x16   : > { %p37_p7 = scmp.ne.s32.totalorder %s1043_s20, %s1039_s19  ;;  %p28_p8 = scmp.eq.s32.totalorder %s27_s28, 0 }
  0x17   : > { %p38_p9 = scmp.eq.s32.totalorder %s1047_s21, 0  ;;  %p43_p10 = scmp.ne.s32.totalorder %s1039_s19, %s1035_s18 }
  0x18   : > { %p151_p11 = scmp.eq.s32.totalorder %s1110_s25, 1  ;;  %p157_p0 = scmp.eq.s32.totalorder %s745_s23, 1 }
  0x19   : > { %s1154_s29 = scalar_select %p28_p8, %s1043_s20, %s30_s27  }
  0x1a   : > { %p1158_p12 = por %p44_p1, %p43_p10  ;;  %p1162_p13 = por %p151_p11, %p37_p7 }
  0x1b   : > { %p39_p2 = por %p38_p9, %p37_p7  ;;  %s220_s7 = sand.u32 1, %s1043_s20  }
  0x1c   : > { %p1167_p4 = por %p157_p0, %p43_p10  ;;  %p800_p6 = scmp.lt.s32.totalorder %s1047_s21, 2 }
  0x1d   : > { %s751_s9 = sshll.u32 %s220_s7, 3  ;;  %s752_s10 = sshll.u32 %s1047_s21, 3 }
  0x1e   : > { %s228_s13 = scalar_lea.hbm %s1252_s0, %s752_s10  ;;  %s224_s15 = scalar_lea.vmem [#allocation2], %s751_s9 }
  0x1f   : > { %s230_s14 = sshll.u32 %s228_s13, 4  ;;  %s232_s16 = sshll.u32 %s224_s15, 4  ;;  %s231_s14 = int_to_ptr.hbm [resolvable:$true] %s230_s14  ;;  %s233_s16 = int_to_ptr.vmem [resolvable:$true] %s232_s16 }
  0x20   : > { %p1176_p8 = pnand %p800_p6, %p39_p2  ;;  %s221_s22 = scalar_lea.sflag [#allocation3], %s220_s7 }
  0x21   : > { %s943_s23 = sshra.s32 %s231_s14, 4  ;;  %s950_s9 = scalar_lea.hbm %s1252_s0, 16  ;;  %s944_s23 = int_to_ptr.hbm [resolvable:$true] %s943_s23 }
  0x22   : > { %s945_s27 = scalar_lea.hbm %s944_s23, 8  ;;  %p947_p9 = pneg %p1176_p8 }
  0x23   : > { %p946_p7 = scmp.ne.s32.totalorder %s944_s23, %s945_s27  ;;  %p951_p0 = scmp.lt.s32.totalorder %s944_s23, %s1252_s0 }
  0x24   : > { %p952_p2 = scmp.lt.s32.totalorder %s950_s9, %s945_s27 }
  0x25   : > { %p948_p10 = pnand %p947_p9, %p946_p7 }
  0x26   : > { %p953_p6 = por %p952_p2, %p951_p0 }
  0x27   : > { %p949_p11 = pneg %p948_p10 }
  0x29   : > { %p954_p5 = pnand %p953_p6, %p949_p11 }
  0x2b   : > { %957 = shalt.err (!%p954_p5)
}
  0x2c   : > { %792 = dma.hbm_to_vmem [thread:$0]  (!%p1176_p8), %s231_s14, 128, %s233_s16, %s221_s22  }
  0x2d   : > { %241 = sbr.rel (%p1115_p3) target bundleno = 383 (0x17f), region = 40  ;;  %s1193_s7 = sand.u32 (!%p1115_p3), 1, %s1039_s19  }
  0x2e   : > { %s754_s13 = sshll.u32 (!%p1115_p3), %s1193_s7, 3  ;;  %s244_s15 = scalar_lea.sflag (!%p1115_p3), [#allocation3], %s1193_s7 }
  0x2f   : > { %s1199_s23 = scalar_lea.vmem (!%p1115_p3), [#allocation2], %s754_s13 }
  0x32   : > { %1018 = dma.done.wait (%p1158_p12), %s244_s15, 128  }
  0x33   : > { %1020 = vsyncadd (%p1158_p12), %s244_s15, 4294967168 }
  0x34   : > { %1022 = dma.done.wait (%p44_p1), [#allocation6], 8256  }
  0x35   : > { %1024 = vsyncadd (%p44_p1), [#allocation6], 4294959040 }
  0x36   : > { %1026 = dma.done.wait (%p44_p1), [#allocation9], 8192  }
  0x37   : > { %1028 = vsyncadd (%p44_p1), [#allocation9], 4294959104  ;;  %v351_v0 = vld [vmem:[#allocation5 + $0x1e0] sm:$0xff]  ;;  %v352_v1 = vld [vmem:[#allocation5 + $0x1e8] sm:$0xff]  ;;  %s760_s14 = sshll.u32 %s1110_s25, 3  ;;  %s289_s27 = scalar_lea.vmem [#allocation10], %s754_s13 }
  0x38   : > { %v353_v2 = vld [vmem:[#allocation5 + $0x1f0] sm:$0xff]  ;;  %365 = vmatpush.msra.mxu0 %v351_v0  ;;  %385 = vmatpush.msra.mxu1 %v352_v1  ;;  %v354_v3 = vld [vmem:[#allocation5 + $0x1f8] sm:$0xff]  ;;  %v347_v4 = vld [vmem:[#allocation5 + $0x1c0] sm:$0xff]  ;;  %s641_s22 = scalar_lea.hbm %s1257_s5, %s760_s14  ;;  %s643_s28 = sshll.u32 %s289_s27, 4  ;;  %s644_s28 = int_to_ptr.vmem [resolvable:$true] %s643_s28 }
  0x39   : > { %v348_v5 = vld [vmem:[#allocation5 + $0x1c8] sm:$0xff]  ;;  %405 = vmatpush.msra.mxu2 %v353_v2  ;;  %425 = vmatpush.msra.mxu3 %v354_v3  ;;  %v349_v6 = vld [vmem:[#allocation5 + $0x1d0] sm:$0xff]  ;;  %v350_v7 = vld [vmem:[#allocation5 + $0x1d8] sm:$0xff]  ;;  %s645_s10 = sshll.u32 %s641_s22, 4  ;;  %s631_s25 = scalar_lea.sflag [#allocation4], %s1193_s7  ;;  %s646_s10 = int_to_ptr.hbm [resolvable:$true] %s645_s10 }
  0x3a   : > { %v343_v8 = vld [vmem:[#allocation5 + $0x1a0] sm:$0xff]  ;;  %366 = vmatpush.msra.mxu0 %v347_v4  ;;  %386 = vmatpush.msra.mxu1 %v348_v5  ;;  %v344_v9 = vld [vmem:[#allocation5 + $0x1a8] sm:$0xff]  ;;  %v345_v10 = vld [vmem:[#allocation5 + $0x1b0] sm:$0xff]  ;;  %s987_s9 = sshra.s32 %s646_s10, 4  ;;  %s993_s13 = scalar_lea.hbm %s1257_s5, 16  ;;  %s988_s9 = int_to_ptr.hbm [resolvable:$true] %s987_s9 }
  0x3b   : > { %v346_v11 = vld [vmem:[#allocation5 + $0x1b8] sm:$0xff]  ;;  %406 = vmatpush.msra.mxu2 %v349_v6  ;;  %426 = vmatpush.msra.mxu3 %v350_v7  ;;  %v339_v12 = vld [vmem:[#allocation5 + $0x180] sm:$0xff]  ;;  %v340_v13 = vld [vmem:[#allocation5 + $0x188] sm:$0xff]  ;;  %s989_s11 = scalar_lea.hbm %s988_s9, 8  ;;  %p994_p12 = scmp.lt.s32.totalorder %s988_s9, %s1257_s5 }
  0x3c   : > { %367 = vmatpush.msra.mxu0 %v343_v8  ;;  %387 = vmatpush.msra.mxu1 %v344_v9  ;;  %v341_v14 = vld [vmem:[#allocation5 + $0x190] sm:$0xff]  ;;  %v342_v15 = vld [vmem:[#allocation5 + $0x198] sm:$0xff]  ;;  %v335_v16 = vld [vmem:[#allocation5 + $0x160] sm:$0xff]  ;;  %p990_p1 = scmp.ne.s32.totalorder %s988_s9, %s989_s11  ;;  %p995_p8 = scmp.lt.s32.totalorder %s993_s13, %s989_s11 }
  0x3d   : > { %407 = vmatpush.msra.mxu2 %v345_v10  ;;  %427 = vmatpush.msra.mxu3 %v346_v11  ;;  %v336_v17 = vld [vmem:[#allocation5 + $0x168] sm:$0xff]  ;;  %v337_v18 = vld [vmem:[#allocation5 + $0x170] sm:$0xff]  ;;  %v338_v19 = vld [vmem:[#allocation5 + $0x178] sm:$0xff] }
  0x3e   : > { %368 = vmatpush.msra.mxu0 %v339_v12  ;;  %388 = vmatpush.msra.mxu1 %v340_v13  ;;  %v331_v20 = vld [vmem:[#allocation5 + $0x140] sm:$0xff]  ;;  %v332_v21 = vld [vmem:[#allocation5 + $0x148] sm:$0xff]  ;;  %v333_v22 = vld [vmem:[#allocation5 + $0x150] sm:$0xff]  ;;  %p991_p3 = pnand %p990_p1, %p1162_p13  ;;  %p996_p7 = por %p995_p8, %p994_p12 }
  0x3f   : > { %408 = vmatpush.msra.mxu2 %v341_v14  ;;  %428 = vmatpush.msra.mxu3 %v342_v15  ;;  %v334_v23 = vld [vmem:[#allocation5 + $0x158] sm:$0xff]  ;;  %v327_v24 = vld [vmem:[#allocation5 + $0x120] sm:$0xff]  ;;  %v328_v25 = vld [vmem:[#allocation5 + $0x128] sm:$0xff] }
  0x40   : > { %369 = vmatpush.msra.mxu0 %v335_v16  ;;  %389 = vmatpush.msra.mxu1 %v336_v17  ;;  %v329_v26 = vld [vmem:[#allocation5 + $0x130] sm:$0xff]  ;;  %v330_v27 = vld [vmem:[#allocation5 + $0x138] sm:$0xff]  ;;  %v323_v28 = vld [vmem:[#allocation5 + $0x100] sm:$0xff]  ;;  %p992_p5 = pneg %p991_p3 }
  0x41   : > { %409 = vmatpush.msra.mxu2 %v337_v18  ;;  %429 = vmatpush.msra.mxu3 %v338_v19  ;;  %v324_v29 = vld [vmem:[#allocation5 + $0x108] sm:$0xff]  ;;  %v325_v30 = vld [vmem:[#allocation5 + $0x110] sm:$0xff]  ;;  %v326_v31 = vld [vmem:[#allocation5 + $0x118] sm:$0xff] }
  0x42   : > { %370 = vmatpush.msra.mxu0 %v331_v20  ;;  %390 = vmatpush.msra.mxu1 %v332_v21  ;;  %v319_v32 = vld [vmem:[#allocation5 + $0xe0] sm:$0xff]  ;;  %v320_v33 = vld [vmem:[#allocation5 + $0xe8] sm:$0xff]  ;;  %v321_v34 = vld [vmem:[#allocation5 + $0xf0] sm:$0xff]  ;;  %p997_p9 = pnand %p996_p7, %p992_p5 }
  0x43   : > { %410 = vmatpush.msra.mxu2 %v333_v22  ;;  %430 = vmatpush.msra.mxu3 %v334_v23  ;;  %v322_v35 = vld [vmem:[#allocation5 + $0xf8] sm:$0xff]  ;;  %v315_v36 = vld [vmem:[#allocation5 + $0xc0] sm:$0xff]  ;;  %v316_v37 = vld [vmem:[#allocation5 + $0xc8] sm:$0xff] }
  0x44   : > { %371 = vmatpush.msra.mxu0 %v327_v24  ;;  %391 = vmatpush.msra.mxu1 %v328_v25  ;;  %v317_v38 = vld [vmem:[#allocation5 + $0xd0] sm:$0xff]  ;;  %v318_v39 = vld [vmem:[#allocation5 + $0xd8] sm:$0xff]  ;;  %v311_v40 = vld [vmem:[#allocation5 + $0xa0] sm:$0xff] }
  0x45   : > { %411 = vmatpush.msra.mxu2 %v329_v26  ;;  %431 = vmatpush.msra.mxu3 %v330_v27  ;;  %v312_v41 = vld [vmem:[#allocation5 + $0xa8] sm:$0xff]  ;;  %v313_v42 = vld [vmem:[#allocation5 + $0xb0] sm:$0xff]  ;;  %v314_v43 = vld [vmem:[#allocation5 + $0xb8] sm:$0xff] }
  0x46   : > { %372 = vmatpush.msra.mxu0 %v323_v28  ;;  %392 = vmatpush.msra.mxu1 %v324_v29  ;;  %v307_v44 = vld [vmem:[#allocation5 + $0x80] sm:$0xff]  ;;  %v308_v45 = vld [vmem:[#allocation5 + $0x88] sm:$0xff]  ;;  %v309_v46 = vld [vmem:[#allocation5 + $0x90] sm:$0xff] }
  0x47   : > { %412 = vmatpush.msra.mxu2 %v325_v30  ;;  %432 = vmatpush.msra.mxu3 %v326_v31  ;;  %v310_v47 = vld [vmem:[#allocation5 + $0x98] sm:$0xff]  ;;  %v303_v48 = vld [vmem:[#allocation5 + $0x60] sm:$0xff]  ;;  %v304_v49 = vld [vmem:[#allocation5 + $0x68] sm:$0xff] }
  0x48   : > { %373 = vmatpush.msra.mxu0 %v319_v32  ;;  %393 = vmatpush.msra.mxu1 %v320_v33  ;;  %v305_v50 = vld [vmem:[#allocation5 + $0x70] sm:$0xff]  ;;  %v306_v51 = vld [vmem:[#allocation5 + $0x78] sm:$0xff]  ;;  %v299_v52 = vld [vmem:[#allocation5 + $0x40] sm:$0xff] }
  0x49   : > { %413 = vmatpush.msra.mxu2 %v321_v34  ;;  %433 = vmatpush.msra.mxu3 %v322_v35  ;;  %v300_v53 = vld [vmem:[#allocation5 + $0x48] sm:$0xff]  ;;  %v301_v54 = vld [vmem:[#allocation5 + $0x50] sm:$0xff]  ;;  %v302_v55 = vld [vmem:[#allocation5 + $0x58] sm:$0xff] }
  0x4a   : > { %374 = vmatpush.msra.mxu0 %v315_v36  ;;  %394 = vmatpush.msra.mxu1 %v316_v37  ;;  %v295_v56 = vld [vmem:[#allocation5 + $0x20] sm:$0xff]  ;;  %v296_v57 = vld [vmem:[#allocation5 + $0x28] sm:$0xff]  ;;  %v297_v58 = vld [vmem:[#allocation5 + $0x30] sm:$0xff] }
  0x4b   : > { %414 = vmatpush.msra.mxu2 %v317_v38  ;;  %434 = vmatpush.msra.mxu3 %v318_v39  ;;  %v298_v59 = vld [vmem:[#allocation5 + $0x38] sm:$0xff]  ;;  %v291_v60 = vld [vmem:[#allocation5] sm:$0xff]  ;;  %v292_v61 = vld [vmem:[#allocation5 + $0x8] sm:$0xff] }
  0x4c   : > { %375 = vmatpush.msra.mxu0 %v311_v40  ;;  %395 = vmatpush.msra.mxu1 %v312_v41  ;;  %v293_v62 = vld [vmem:[#allocation5 + $0x10] sm:$0xff]  ;;  %v294_v63 = vld [vmem:[#allocation5 + $0x18] sm:$0xff]  ;;  %v493_v9 = vld [vmem:[#allocation8 + $0x60] sm:$0xff] }
  0x4d   : > { %415 = vmatpush.msra.mxu2 %v313_v42  ;;  %435 = vmatpush.msra.mxu3 %v314_v43  ;;  %v290_v0 = vld [vmem:[%s1199_s23] sm:$0xff]  ;;  %v509_v10 = vld [vmem:[#allocation8 + $0xe0] sm:$0xff] }
  0x4e   : > { %376 = vmatpush.msra.mxu0 %v307_v44  ;;  %396 = vmatpush.msra.mxu1 %v308_v45  ;;  %v496_v1 = vld [vmem:[#allocation8 + $0x78] sm:$0xff]  ;;  %v495_v5 = vld [vmem:[#allocation8 + $0x70] sm:$0xff]  ;;  %v494_v7 = vld [vmem:[#allocation8 + $0x68] sm:$0xff] }
  0x4f   : > { %416 = vmatpush.msra.mxu2 %v309_v46  ;;  %436 = vmatpush.msra.mxu3 %v310_v47  ;;  %v512_v2 = vld [vmem:[#allocation8 + $0xf8] sm:$0xff]  ;;  %v511_v6 = vld [vmem:[#allocation8 + $0xf0] sm:$0xff]  ;;  %v510_v8 = vld [vmem:[#allocation8 + $0xe8] sm:$0xff] }
  0x50   : > { %377 = vmatpush.msra.mxu0 %v303_v48  ;;  %397 = vmatpush.msra.mxu1 %v304_v49  ;;  %v528_v3 = vld [vmem:[#allocation8 + $0x178] sm:$0xff]  ;;  %v527_v13 = vld [vmem:[#allocation8 + $0x170] sm:$0xff]  ;;  %v526_v17 = vld [vmem:[#allocation8 + $0x168] sm:$0xff] }
  0x51   : > { %417 = vmatpush.msra.mxu2 %v305_v50  ;;  %437 = vmatpush.msra.mxu3 %v306_v51  ;;  %v544_v4 = vld [vmem:[#allocation8 + $0x1f8] sm:$0xff]  ;;  %v543_v14 = vld [vmem:[#allocation8 + $0x1f0] sm:$0xff]  ;;  %v542_v18 = vld [vmem:[#allocation8 + $0x1e8] sm:$0xff] }
  0x52   : > { %378 = vmatpush.msra.mxu0 %v299_v52  ;;  %398 = vmatpush.msra.mxu1 %v300_v53  ;;  %v492_v11 = vld [vmem:[#allocation8 + $0x58] sm:$0xff]  ;;  %v491_v15 = vld [vmem:[#allocation8 + $0x50] sm:$0xff]  ;;  %v490_v19 = vld [vmem:[#allocation8 + $0x48] sm:$0xff] }
  0x53   : > { %418 = vmatpush.msra.mxu2 %v301_v54  ;;  %438 = vmatpush.msra.mxu3 %v302_v55  ;;  %v508_v12 = vld [vmem:[#allocation8 + $0xd8] sm:$0xff]  ;;  %v507_v16 = vld [vmem:[#allocation8 + $0xd0] sm:$0xff]  ;;  %v506_v20 = vld [vmem:[#allocation8 + $0xc8] sm:$0xff] }
  0x54   : > { %379 = vmatpush.msra.mxu0 %v295_v56  ;;  %399 = vmatpush.msra.mxu1 %v296_v57  ;;  %v525_v21 = vld [vmem:[#allocation8 + $0x160] sm:$0xff]  ;;  %v524_v25 = vld [vmem:[#allocation8 + $0x158] sm:$0xff]  ;;  %v523_v29 = vld [vmem:[#allocation8 + $0x150] sm:$0xff] }
  0x55   : > { %419 = vmatpush.msra.mxu2 %v297_v58  ;;  %439 = vmatpush.msra.mxu3 %v298_v59  ;;  %v541_v22 = vld [vmem:[#allocation8 + $0x1e0] sm:$0xff]  ;;  %v540_v26 = vld [vmem:[#allocation8 + $0x1d8] sm:$0xff]  ;;  %v539_v30 = vld [vmem:[#allocation8 + $0x1d0] sm:$0xff] }
  0x56   : > { %380 = vmatpush.msra.mxu0 %v291_v60  ;;  %400 = vmatpush.msra.mxu1 %v292_v61  ;;  %v489_v23 = vld [vmem:[#allocation8 + $0x40] sm:$0xff]  ;;  %v488_v27 = vld [vmem:[#allocation8 + $0x38] sm:$0xff]  ;;  %v487_v31 = vld [vmem:[#allocation8 + $0x30] sm:$0xff] }
  0x57   : > { %420 = vmatpush.msra.mxu2 %v293_v62  ;;  %440 = vmatpush.msra.mxu3 %v294_v63  ;;  %v505_v24 = vld [vmem:[#allocation8 + $0xc0] sm:$0xff]  ;;  %v504_v28 = vld [vmem:[#allocation8 + $0xb8] sm:$0xff]  ;;  %v503_v32 = vld [vmem:[#allocation8 + $0xb0] sm:$0xff] }
  0x58   : > { %381 = vmatmul.f32.vlgmr.msra.gmra.mxu0 %v290_v0  ;;  %401 = vmatmul.f32.vlgmr.msra.gmra.mxu1 %v290_v0  ;;  %v522_v33 = vld [vmem:[#allocation8 + $0x148] sm:$0xff]  ;;  %v521_v37 = vld [vmem:[#allocation8 + $0x140] sm:$0xff]  ;;  %v520_v41 = vld [vmem:[#allocation8 + $0x138] sm:$0xff] }
  0x59   : > { %421 = vmatmul.f32.vlgmr.msra.gmra.mxu2 %v290_v0  ;;  %441 = vmatmul.f32.vlgmr.msra.gmra.mxu3 %v290_v0  ;;  %v538_v34 = vld [vmem:[#allocation8 + $0x1c8] sm:$0xff]  ;;  %v537_v38 = vld [vmem:[#allocation8 + $0x1c0] sm:$0xff]  ;;  %v536_v42 = vld [vmem:[#allocation8 + $0x1b8] sm:$0xff] }
  0x5a   : > { %549 = vmatpush.msrb.mxu0 %v496_v1  ;;  %569 = vmatpush.msrb.mxu1 %v512_v2  ;;  %v486_v35 = vld [vmem:[#allocation8 + $0x28] sm:$0xff]  ;;  %v485_v39 = vld [vmem:[#allocation8 + $0x20] sm:$0xff]  ;;  %v484_v43 = vld [vmem:[#allocation8 + $0x18] sm:$0xff] }
  0x5b   : > { %589 = vmatpush.msrb.mxu2 %v528_v3  ;;  %609 = vmatpush.msrb.mxu3 %v544_v4  ;;  %v502_v36 = vld [vmem:[#allocation8 + $0xa8] sm:$0xff]  ;;  %v501_v40 = vld [vmem:[#allocation8 + $0xa0] sm:$0xff]  ;;  %v500_v44 = vld [vmem:[#allocation8 + $0x98] sm:$0xff] }
  0x5c   : > { %550 = vmatpush.msrb.mxu0 %v495_v5  ;;  %570 = vmatpush.msrb.mxu1 %v511_v6  ;;  %v519_v45 = vld [vmem:[#allocation8 + $0x130] sm:$0xff]  ;;  %v518_v49 = vld [vmem:[#allocation8 + $0x128] sm:$0xff]  ;;  %v517_v53 = vld [vmem:[#allocation8 + $0x120] sm:$0xff] }
  0x5d   : > { %590 = vmatpush.msrb.mxu2 %v527_v13  ;;  %610 = vmatpush.msrb.mxu3 %v543_v14  ;;  %v535_v46 = vld [vmem:[#allocation8 + $0x1b0] sm:$0xff]  ;;  %v534_v50 = vld [vmem:[#allocation8 + $0x1a8] sm:$0xff]  ;;  %v533_v54 = vld [vmem:[#allocation8 + $0x1a0] sm:$0xff] }
  0x5e   : > { %551 = vmatpush.msrb.mxu0 %v494_v7  ;;  %571 = vmatpush.msrb.mxu1 %v510_v8  ;;  %v483_v47 = vld [vmem:[#allocation8 + $0x10] sm:$0xff]  ;;  %v482_v51 = vld [vmem:[#allocation8 + $0x8] sm:$0xff]  ;;  %v481_v55 = vld [vmem:[#allocation8] sm:$0xff] }
  0x5f   : > { %591 = vmatpush.msrb.mxu2 %v526_v17  ;;  %611 = vmatpush.msrb.mxu3 %v542_v18  ;;  %v499_v48 = vld [vmem:[#allocation8 + $0x90] sm:$0xff]  ;;  %v498_v52 = vld [vmem:[#allocation8 + $0x88] sm:$0xff]  ;;  %v497_v56 = vld [vmem:[#allocation8 + $0x80] sm:$0xff] }
  0x60   : > { %552 = vmatpush.msrb.mxu0 %v493_v9  ;;  %572 = vmatpush.msrb.mxu1 %v509_v10  ;;  %v516_v57 = vld [vmem:[#allocation8 + $0x118] sm:$0xff]  ;;  %v515_v59 = vld [vmem:[#allocation8 + $0x110] sm:$0xff]  ;;  %v514_v62 = vld [vmem:[#allocation8 + $0x108] sm:$0xff] }
  0x61   : > { %592 = vmatpush.msrb.mxu2 %v525_v21  ;;  %612 = vmatpush.msrb.mxu3 %v541_v22  ;;  %v532_v58 = vld [vmem:[#allocation8 + $0x198] sm:$0xff]  ;;  %v531_v60 = vld [vmem:[#allocation8 + $0x190] sm:$0xff]  ;;  %v530_v63 = vld [vmem:[#allocation8 + $0x188] sm:$0xff] }
  0x62   : > { %553 = vmatpush.msrb.mxu0 %v492_v11  ;;  %573 = vmatpush.msrb.mxu1 %v508_v12  ;;  %v355_v61 = vld [vmem:[#allocation7] sm:$0xf]  ;;  %v513_v0 = vld [vmem:[#allocation8 + $0x100] sm:$0xff] }
  0x63   : > { %593 = vmatpush.msrb.mxu2 %v524_v25  ;;  %613 = vmatpush.msrb.mxu3 %v540_v26  ;;  %v529_v1 = vld [vmem:[#allocation8 + $0x180] sm:$0xff]  ;;  %v357_v2 = vperm.slane %v355_v61, 0  ;;  %v358_v3 = vperm.slane %v355_v61, 1  ;;  %v359_v10 = vperm.slane %v355_v61, 2  ;;  %v360_v11 = vperm.slane %v355_v61, 3 }
  0x64   : > { %554 = vmatpush.msrb.mxu0 %v491_v15  ;;  %574 = vmatpush.msrb.mxu1 %v507_v16 }
  0x65   : > { %594 = vmatpush.msrb.mxu2 %v523_v29  ;;  %614 = vmatpush.msrb.mxu3 %v539_v30 }
  0x66   : > { %555 = vmatpush.msrb.mxu0 %v490_v19  ;;  %575 = vmatpush.msrb.mxu1 %v506_v20 }
  0x67   : > { %595 = vmatpush.msrb.mxu2 %v522_v33  ;;  %615 = vmatpush.msrb.mxu3 %v538_v34 }
  0x68   : > { %556 = vmatpush.msrb.mxu0 %v489_v23  ;;  %576 = vmatpush.msrb.mxu1 %v505_v24 }
  0x69   : > { %596 = vmatpush.msrb.mxu2 %v521_v37  ;;  %616 = vmatpush.msrb.mxu3 %v537_v38 }
  0x6a   : > { %557 = vmatpush.msrb.mxu0 %v488_v27  ;;  %577 = vmatpush.msrb.mxu1 %v504_v28 }
  0x6b   : > { %597 = vmatpush.msrb.mxu2 %v520_v41  ;;  %617 = vmatpush.msrb.mxu3 %v536_v42 }
  0x6c   : > { %558 = vmatpush.msrb.mxu0 %v487_v31  ;;  %578 = vmatpush.msrb.mxu1 %v503_v32 }
  0x6d   : > { %598 = vmatpush.msrb.mxu2 %v519_v45  ;;  %618 = vmatpush.msrb.mxu3 %v535_v46 }
  0x6e   : > { %559 = vmatpush.msrb.mxu0 %v486_v35  ;;  %579 = vmatpush.msrb.mxu1 %v502_v36 }
  0x6f   : > { %599 = vmatpush.msrb.mxu2 %v518_v49  ;;  %619 = vmatpush.msrb.mxu3 %v534_v50  ;;  %v844_v50 = vld [vmem:[%s1256_s4] ss:$0 sm:$0xff] }
  0x70   : > { %560 = vmatpush.msrb.mxu0 %v485_v39  ;;  %580 = vmatpush.msrb.mxu1 %v501_v40 }
  0x71   : > { %600 = vmatpush.msrb.mxu2 %v517_v53  ;;  %620 = vmatpush.msrb.mxu3 %v533_v54 }
  0x72   : > { %561 = vmatpush.msrb.mxu0 %v484_v43  ;;  %581 = vmatpush.msrb.mxu1 %v500_v44 }
  0x73   : > { %601 = vmatpush.msrb.mxu2 %v516_v57  ;;  %621 = vmatpush.msrb.mxu3 %v532_v58 }
  0x74   : > { %562 = vmatpush.msrb.mxu0 %v483_v47  ;;  %582 = vmatpush.msrb.mxu1 %v499_v48 }
  0x75   : > { %602 = vmatpush.msrb.mxu2 %v515_v59  ;;  %622 = vmatpush.msrb.mxu3 %v531_v60 }
  0x76   : > { %563 = vmatpush.msrb.mxu0 %v482_v51  ;;  %583 = vmatpush.msrb.mxu1 %v498_v52 }
  0x77   : > { %603 = vmatpush.msrb.mxu2 %v514_v62  ;;  %623 = vmatpush.msrb.mxu3 %v530_v63 }
  0x78   : > { %564 = vmatpush.msrb.mxu0 %v481_v55  ;;  %584 = vmatpush.msrb.mxu1 %v497_v56 }
  0x79   : > { %604 = vmatpush.msrb.mxu2 %v513_v0  ;;  %624 = vmatpush.msrb.mxu3 %v529_v1 }
  0xd5   : > { %v382_v4 = vpop.f32.mrf.mxu0  ;;  %v402_v5 = vpop.f32.mrf.mxu1 }
  0xd6   : > { %v383_v6 = vadd.f32 %v382_v4, %v357_v2  ;;  %v403_v7 = vadd.f32 %v402_v5, %v358_v3 }
  0xd8   : > { %v449_v8 = vmul.f32 0.044715, %v383_v6  ;;  %v450_v9 = vmul.f32 0.044715, %v403_v7  ;;  %v445_v36 = vmul.f32 0.5, %v383_v6  ;;  %v446_v38 = vmul.f32 0.5, %v403_v7 }
  0xda   : > { %v453_v12 = vmul.f32 %v449_v8, %v383_v6  ;;  %v454_v13 = vmul.f32 %v450_v9, %v403_v7 }
  0xdc   : > { %v422_v14 = vpop.f32.mrf.mxu2  ;;  %v442_v15 = vpop.f32.mrf.mxu3  ;;  %v457_v16 = vmul.f32 %v453_v12, %v383_v6  ;;  %v458_v17 = vmul.f32 %v454_v13, %v403_v7 }
  0xdd   : > { %v423_v18 = vadd.f32 %v422_v14, %v359_v10  ;;  %v443_v19 = vadd.f32 %v442_v15, %v360_v11 }
  0xde   : > { %v461_v20 = vadd.f32 %v457_v16, %v383_v6  ;;  %v462_v21 = vadd.f32 %v458_v17, %v403_v7 }
  0xdf   : > { %v451_v22 = vmul.f32 0.044715, %v423_v18  ;;  %v452_v23 = vmul.f32 0.044715, %v443_v19  ;;  %v447_v44 = vmul.f32 0.5, %v423_v18  ;;  %v448_v46 = vmul.f32 0.5, %v443_v19 }
  0xe0   : > { %v465_v24 = vmul.f32 0.7978846, %v461_v20  ;;  %v466_v25 = vmul.f32 0.7978846, %v462_v21 }
  0xe1   : > { %v455_v26 = vmul.f32 %v451_v22, %v423_v18  ;;  %v456_v27 = vmul.f32 %v452_v23, %v443_v19 }
  0xe2   : > { %845 = vtanh.f32 %v465_v24 }
  0xe3   : > { %847 = vtanh.f32 %v466_v25  ;;  %v459_v28 = vmul.f32 %v455_v26, %v423_v18  ;;  %v460_v29 = vmul.f32 %v456_v27, %v443_v19 }
  0xe5   : > { %v463_v30 = vadd.f32 %v459_v28, %v423_v18  ;;  %v464_v31 = vadd.f32 %v460_v29, %v443_v19 }
  0xe7   : > { %v467_v32 = vmul.f32 0.7978846, %v463_v30  ;;  %v468_v33 = vmul.f32 0.7978846, %v464_v31 }
  0xe8   : > { %v846_v34 = vpop.eup %845 }
  0xe9   : > { %v848_v35 = vpop.eup %847  ;;  %v473_v37 = vadd.f32 1.0, %v846_v34  ;;  %849 = vtanh.f32 %v467_v32 }
  0xea   : > { %v474_v39 = vadd.f32 1.0, %v848_v35  ;;  %851 = vtanh.f32 %v468_v33 }
  0xeb   : > { %v477_v40 = vmul.f32 %v473_v37, %v445_v36 }
  0xec   : > { %v478_v41 = vmul.f32 %v474_v39, %v446_v38 }
  0xed   : > { %565 = vmatmul.f32.vlgmr.msrb.gmra.mxu0 %v477_v40 }
  0xee   : > { %585 = vmatmul.f32.vlgmr.msrb.gmra.mxu1 %v478_v41 }
  0xef   : > { %v850_v42 = vpop.eup %849 }
  0xf0   : > { %v852_v43 = vpop.eup %851  ;;  %v475_v45 = vadd.f32 1.0, %v850_v42 }
  0xf1   : > { %v476_v47 = vadd.f32 1.0, %v852_v43 }
  0xf2   : > { %v479_v48 = vmul.f32 %v475_v45, %v447_v44 }
  0xf3   : > { %v480_v49 = vmul.f32 %v476_v47, %v448_v46 }
  0xf4   : > { %605 = vmatmul.f32.vlgmr.msrb.gmra.mxu2 %v479_v48 }
  0xf5   : > { %625 = vmatmul.f32.vlgmr.msrb.gmra.mxu3 %v480_v49 }
 0x16a   : > { %v566_v51 = vpop.f32.mrf.mxu0 }
 0x16b   : > { %v567_v52 = vadd.f32 %v844_v50, %v566_v51  ;;  %v586_v53 = vpop.f32.mrf.mxu1 }
 0x16d   : > { %v587_v54 = vadd.f32 %v586_v53, %v567_v52 }
 0x177   : > { %v606_v55 = vpop.f32.mrf.mxu2 }
 0x178   : > { %v607_v56 = vadd.f32 %v606_v55, %v587_v54  ;;  %v626_v57 = vpop.f32.mrf.mxu3 }
 0x17a   : > { %v627_v58 = vadd.f32 %v626_v57, %v607_v56 }
 0x17c   : > { %629 = vst [vmem:[%s289_s27] sm:$0xff] %v627_v58 }
 0x17d   : > { %1000 = shalt.err (!%p997_p9)
}
 0x17e   : > { %777 = dma.vmem_to_hbm [thread:$0]  (%p1162_p13), %s644_s28, 128, %s646_s10, %s631_s25  }
 0x17f PF: > { %s657_s7 = sand.u32 1, %s1035_s18   ;;  %p1264_p10 = scmp.ge.s32.totalorder %s1047_s21, 2 }
 0x180   : > { %s658_s30 = scalar_lea.sflag [#allocation4], %s657_s7 }
 0x181   : > { %p794_p11 = pnand %p1264_p10, %p1167_p4 }
 0x183   : > { %p795_p0 = pneg %p794_p11 }
 0x185   : > { %1030 = dma.done.wait (%p795_p0), %s658_s30, 128  }
 0x186   : > { %1032 = vsyncadd (%p795_p0), %s658_s30, 4294967168  ;;  %p20_p2 = scmp.ge.s32.totalorder %s1142_s24, 4   ;;  %s1265_s18 = smov %s1039_s19 }
 0x187   : > { %s1266_s19 = smov %s1043_s20  ;;  %s1267_s20 = smov %s1154_s29 }
 0x188   : > { %s1268_s21 = smov %s1142_s24  ;;  %22 = sbr.rel (!%p20_p2) target bundleno = 7 (0x7), region = 97 }
 0x18d   :  { %664 = vsyncpa [#allocation3], 1 }
 0x18e   :  { %666 = vsyncpa [#allocation3 + $0x1], 1 }
 0x18f   :  { %667 = vsyncpa [#allocation6], 1 }
 0x190   :  { %668 = vsyncpa [#allocation9], 1 }
 0x191   :  { %669 = vsyncpa [#allocation4], 1 }
 0x192   :  { %671 = vsyncpa [#allocation4 + $0x1], 1 }

</bundles_post_ra>
